<compile_context>
chip_gen: v5e
topology: v5e:2x2
jax: 0.10.0
libtpu: 0.0.40
codegen_flags: <defaults>
</compile_context>

<pallas_src>
import functools

import jax
import jax.numpy as jnp
from jax.experimental import pallas as pl
from jax.experimental.pallas import tpu as pltpu


# ---------------------------------------------------------------------------
# In-kernel helpers
# ---------------------------------------------------------------------------

def _layernorm(x, g):
    # x: (N, D), g: (1, D). x_transformers zero-bias LayerNorm, eps=1e-5.
    mu = jnp.mean(x, axis=-1, keepdims=True)
    xc = x - mu
    var = jnp.mean(xc * xc, axis=-1, keepdims=True)
    return xc * jax.lax.rsqrt(var + 1e-5) * g


# ---------------------------------------------------------------------------
# Pallas kernels
# ---------------------------------------------------------------------------

def _proj_in_pos_kernel(x_ref, w_ref, pe_ref, o_ref):
    # x: (1, S, Din)  w: (Din, D)  pe: (S, D) (pre-scaled by D**-0.5)  o: (1, S, D)
    o_ref[0] = (
        jnp.dot(x_ref[0], w_ref[...], preferred_element_type=jnp.float32)
        + pe_ref[...]
    )


def _block_kernel(x_ref, bias_ref, ln1_ref, wq_ref, wk_ref, wv_ref, wo_ref,
                  ln2_ref, w1_ref, b1_ref, w2_ref, b2_ref, o_ref, *, heads):
    # Whole pre-norm encoder block for one batch element, fully fused in VMEM.
    # x: (1,S,D)  bias: (1,1,S) additive (0 / -1e30)
    # wq/wk/wv: (H, D, Dh)  (attention scale folded into wq)   wo: (H, Dh, D)
    # w1: (D, F) b1: (1, F)  w2: (F, D) b2: (1, D)
    x = x_ref[0]                                     # (S, D)
    S, D = x.shape

    # ---- attention: LN -> batched-head QKV -> softmax -> PV -> Wo -> residual
    xn = _layernorm(x, ln1_ref[...])
    xn_h = jnp.broadcast_to(xn[None], (heads, S, D))               # (H, S, D)
    q = jnp.einsum('hsd,hde->hse', xn_h, wq_ref[...],
                   preferred_element_type=jnp.float32)             # (H, S, Dh)
    k = jnp.einsum('hsd,hde->hse', xn_h, wk_ref[...],
                   preferred_element_type=jnp.float32)
    v = jnp.einsum('hsd,hde->hse', xn_h, wv_ref[...],
                   preferred_element_type=jnp.float32)
    s = jnp.einsum('hqe,hke->hqk', q, k,
                   preferred_element_type=jnp.float32)             # (H, S, S)
    p = jax.nn.softmax(s + bias_ref[...], axis=-1)                 # additive mask
    o = jnp.einsum('hqk,hke->hqe', p, v,
                   preferred_element_type=jnp.float32)             # (H, S, Dh)
    attn = jnp.einsum('hse,hed->hsd', o, wo_ref[...],
                      preferred_element_type=jnp.float32)          # (H, S, D)
    x = x + jnp.sum(attn, axis=0)

    # ---- feed-forward: LN -> W1+b1 -> GELU -> W2+b2 -> residual
    xn2 = _layernorm(x, ln2_ref[...])
    hmid = jnp.dot(xn2, w1_ref[...], preferred_element_type=jnp.float32) + b1_ref[...]
    hmid = jax.nn.gelu(hmid, approximate=False)      # matches torch nn.GELU()
    x = x + jnp.dot(hmid, w2_ref[...], preferred_element_type=jnp.float32) + b2_ref[...]

    o_ref[0] = x


def _final_kernel(x_ref, g_ref, w_ref, o_ref):
    # fused final LayerNorm + project_out.  x: (1,S,D)  g: (1,D)  w: (D,Dout)
    xn = _layernorm(x_ref[0], g_ref[...])
    o_ref[0] = jnp.dot(xn, w_ref[...], preferred_element_type=jnp.float32)


# ---------------------------------------------------------------------------
# Parameter construction (deterministic, synthetic)
# ---------------------------------------------------------------------------

def init_params(key, *, dim_in, dim, dim_out, depth, heads, dim_head, ff_mult,
                max_seq_len):
    ff_inner = dim * ff_mult

    def nrm(k, shape, scale=0.02):
        return jax.random.normal(k, shape, jnp.float32) * scale

    keys = jax.random.split(key, 3 + depth * 6)
    params = {
        "dim": dim,
        "heads": heads,
        "dim_head": dim_head,
        "w_in": nrm(keys[0], (dim_in, dim)),          # Linear(dim_in, dim, bias=False).T
        # absolute positional embedding, pre-scaled by dim**-0.5 (folded at init)
        "pos_emb": jax.random.normal(keys[1], (max_seq_len, dim), jnp.float32)
                   * (dim ** -0.5),
        "w_out": nrm(keys[2], (dim, dim_out)),        # Linear(dim, dim_out, bias=False).T
        "final_ln_g": jnp.ones((1, dim), jnp.float32),
        "layers": [],
    }
    for l in range(depth):
        k = keys[3 + 6 * l: 3 + 6 * (l + 1)]
        params["layers"].append({
            "ln1_g": jnp.ones((1, dim), jnp.float32),
            # per-head projections, head-major, attention scale folded into wq
            "wq": nrm(k[0], (heads, dim, dim_head)) * (dim_head ** -0.5),
            "wk": nrm(k[1], (heads, dim, dim_head)),
            "wv": nrm(k[2], (heads, dim, dim_head)),
            "wo": nrm(k[3], (heads, dim_head, dim)),
            "ln2_g": jnp.ones((1, dim), jnp.float32),
            "w1": nrm(k[4], (dim, ff_inner)),
            "b1": jnp.zeros((1, ff_inner), jnp.float32),
            "w2": nrm(k[5], (ff_inner, dim)),
            "b2": jnp.zeros((1, dim), jnp.float32),
        })
    return params


# ---------------------------------------------------------------------------
# Forward pass
# ---------------------------------------------------------------------------

def continuous_transformer_forward(params, x, mask=None):
    B, S, Din = x.shape
    D = params["dim"]
    heads, dim_head = params["heads"], params["dim_head"]
    dim_out = params["w_out"].shape[1]
    ff_inner = params["layers"][0]["w1"].shape[1]

    if mask is None:
        mask = jnp.ones((B, S), dtype=bool)
    # additive attention bias computed ONCE (0 = keep, -1e30 = masked key)
    bias = jnp.where(mask, 0.0, -1e30).astype(jnp.float32).reshape(B, 1, S)

    parallel = pltpu.CompilerParams(dimension_semantics=("parallel",))

    # --- project_in + absolute positional embedding (fused) -----------------
    h = pl.pallas_call(
        _proj_in_pos_kernel,
        out_shape=jax.ShapeDtypeStruct((B, S, D), jnp.float32),
        grid=(B,),
        in_specs=[
            pl.BlockSpec((1, S, Din), lambda b: (b, 0, 0)),
            pl.BlockSpec((Din, D), lambda b: (0, 0)),
            pl.BlockSpec((S, D), lambda b: (0, 0)),
        ],
        out_specs=pl.BlockSpec((1, S, D), lambda b: (b, 0, 0)),
        compiler_params=parallel,
    )(x, params["w_in"], params["pos_emb"][:S])

    # --- fused encoder block (one pallas_call per layer) ---------------------
    block = pl.pallas_call(
        functools.partial(_block_kernel, heads=heads),
        out_shape=jax.ShapeDtypeStruct((B, S, D), jnp.float32),
        grid=(B,),
        in_specs=[
            pl.BlockSpec((1, S, D), lambda b: (b, 0, 0)),               # x
            pl.BlockSpec((1, 1, S), lambda b: (b, 0, 0)),               # bias
            pl.BlockSpec((1, D), lambda b: (0, 0)),                     # ln1_g
            pl.BlockSpec((heads, D, dim_head), lambda b: (0, 0, 0)),    # wq
            pl.BlockSpec((heads, D, dim_head), lambda b: (0, 0, 0)),    # wk
            pl.BlockSpec((heads, D, dim_head), lambda b: (0, 0, 0)),    # wv
            pl.BlockSpec((heads, dim_head, D), lambda b: (0, 0, 0)),    # wo
            pl.BlockSpec((1, D), lambda b: (0, 0)),                     # ln2_g
            pl.BlockSpec((D, ff_inner), lambda b: (0, 0)),              # w1
            pl.BlockSpec((1, ff_inner), lambda b: (0, 0)),              # b1
            pl.BlockSpec((ff_inner, D), lambda b: (0, 0)),              # w2
            pl.BlockSpec((1, D), lambda b: (0, 0)),                     # b2
        ],
        out_specs=pl.BlockSpec((1, S, D), lambda b: (b, 0, 0)),
        compiler_params=parallel,
    )

    for layer in params["layers"]:
        h = block(h, bias, layer["ln1_g"], layer["wq"], layer["wk"], layer["wv"],
                  layer["wo"], layer["ln2_g"], layer["w1"], layer["b1"],
                  layer["w2"], layer["b2"])

    # --- final LayerNorm + project_out (fused) --------------------------------
    out = pl.pallas_call(
        _final_kernel,
        out_shape=jax.ShapeDtypeStruct((B, S, dim_out), jnp.float32),
        grid=(B,),
        in_specs=[
            pl.BlockSpec((1, S, D), lambda b: (b, 0, 0)),
            pl.BlockSpec((1, D), lambda b: (0, 0)),
            pl.BlockSpec((D, dim_out), lambda b: (0, 0)),
        ],
        out_specs=pl.BlockSpec((1, S, dim_out), lambda b: (b, 0, 0)),
        compiler_params=parallel,
    )(h, params["final_ln_g"], params["w_out"])

    return out


# ---------------------------------------------------------------------------
# Pure-JAX reference (same math, no Pallas) for correctness checking
# ---------------------------------------------------------------------------

def reference_forward(params, x, mask):
    S = x.shape[1]
    bias = jnp.where(mask, 0.0, -1e30).astype(jnp.float32)          # (B, S)

    def ln(t, g):
        mu = jnp.mean(t, -1, keepdims=True)
        var = jnp.mean((t - mu) ** 2, -1, keepdims=True)
        return (t - mu) * jax.lax.rsqrt(var + 1e-5) * g[0]

    h = jnp.einsum("bsk,kd->bsd", x, params["w_in"]) + params["pos_emb"][:S][None]

    for layer in params["layers"]:
        xn = ln(h, layer["ln1_g"])
        q = jnp.einsum("bsd,hde->bhse", xn, layer["wq"])   # scale already folded in
        k = jnp.einsum("bsd,hde->bhse", xn, layer["wk"])
        v = jnp.einsum("bsd,hde->bhse", xn, layer["wv"])
        s = jnp.einsum("bhqe,bhke->bhqk", q, k) + bias[:, None, None, :]
        p = jax.nn.softmax(s, -1)
        o = jnp.einsum("bhqk,bhke->bhqe", p, v)
        h = jnp.einsum("bhse,hed->bsd", o, layer["wo"]) + h

        xn = ln(h, layer["ln2_g"])
        f = jax.nn.gelu(jnp.einsum("bsd,df->bsf", xn, layer["w1"]) + layer["b1"][0],
                        approximate=False)
        h = jnp.einsum("bsf,fd->bsd", f, layer["w2"]) + layer["b2"][0] + h

    xn = ln(h, params["final_ln_g"])
    return jnp.einsum("bsd,do->bso", xn, params["w_out"])


# ---------------------------------------------------------------------------
# main
# ---------------------------------------------------------------------------

if __name__ == "__main__":
    # Small but lane-dense config: D = H*Dh = 128, F = 512 (multiples of 128).
    B, S = 2, 8
    DIM_IN, DIM, DIM_OUT = 4, 128, 4
    DEPTH, HEADS, DIM_HEAD, FF_MULT = 2, 4, 32, 4
    MAX_SEQ_LEN = 16

    root = jax.random.PRNGKey(0)
    k_param, k_x = jax.random.split(root)

    params = init_params(
        k_param,
        dim_in=DIM_IN, dim=DIM, dim_out=DIM_OUT,
        depth=DEPTH, heads=HEADS, dim_head=DIM_HEAD, ff_mult=FF_MULT,
        max_seq_len=MAX_SEQ_LEN,
    )

    x = jax.random.normal(k_x, (B, S, DIM_IN), jnp.float32)
    # mask the last two positions of batch element 1 to exercise key masking
    mask = jnp.ones((B, S), dtype=bool).at[1, -2:].set(False)

    out = continuous_transformer_forward(params, x, mask)
    out = jax.block_until_ready(out)

    ref = jax.block_until_ready(reference_forward(params, x, mask))
    assert out.shape == (B, S, DIM_OUT)
    assert jnp.allclose(out, ref, atol=2e-4, rtol=2e-4), (
        f"max abs diff {jnp.max(jnp.abs(out - ref))}"
    )

    print("KERNEL_OK")
</pallas_src>

<mosaic_0001>
module attributes {stable_mosaic.version = 11 : i64} {
  func.func @_proj_in_pos_kernel(%arg0: i32, %arg1: memref<1x8x4xf32, #tpu.memory_space<vmem>>, %arg2: memref<4x128xf32, #tpu.memory_space<vmem>>, %arg3: memref<8x128xf32, #tpu.memory_space<vmem>>, %arg4: memref<1x8x128xf32, #tpu.memory_space<vmem>>) attributes {dimension_semantics = [#tpu.dimension_semantics<parallel>], iteration_bounds = array<i64: 2>, scalar_prefetch = 0 : i64, scratch_operands = 0 : i64, tpu.core_type = #tpu.core_type<tc>, window_params = [{transform_indices = @transform_0, window_bounds = array<i64: 1, 8, 4>}, {pipeline_mode = #tpu.pipeline_mode<synchronous>, transform_indices = @transform_1, window_bounds = array<i64: 4, 128>}, {pipeline_mode = #tpu.pipeline_mode<synchronous>, transform_indices = @transform_2, window_bounds = array<i64: 8, 128>}, {transform_indices = @transform_3, window_bounds = array<i64: 1, 8, 128>}]} {
    %c0 = arith.constant 0 : index
    %c0_0 = arith.constant 0 : index
    %c0_1 = arith.constant 0 : index
    %0 = vector.load %arg1[%c0, %c0_0, %c0_1] : memref<1x8x4xf32, #tpu.memory_space<vmem>>, vector<1x8x4xf32>
    %1 = vector.shape_cast %0 : vector<1x8x4xf32> to vector<8x4xf32>
    %c0_2 = arith.constant 0 : index
    %c0_3 = arith.constant 0 : index
    %2 = vector.load %arg2[%c0_2, %c0_3] : memref<4x128xf32, #tpu.memory_space<vmem>>, vector<4x128xf32>
    %cst = arith.constant dense<0.000000e+00> : vector<8x128xf32>
    %3 = tpu.matmul %1, %2, %cst {dimension_numbers = #tpu.dot_dimension_numbers<[1], [0], [0], [1], [0, 0, 1, 1], [], []>} : vector<8x4xf32>, vector<4x128xf32>, vector<8x128xf32> -> vector<8x128xf32>
    %c0_4 = arith.constant 0 : index
    %c0_5 = arith.constant 0 : index
    %4 = vector.load %arg3[%c0_4, %c0_5] : memref<8x128xf32, #tpu.memory_space<vmem>>, vector<8x128xf32>
    %5 = arith.addf %3, %4 : vector<8x128xf32>
    %c0_6 = arith.constant 0 : index
    %c0_7 = arith.constant 0 : index
    %c0_8 = arith.constant 0 : index
    %6 = vector.load %arg4[%c0_6, %c0_7, %c0_8] : memref<1x8x128xf32, #tpu.memory_space<vmem>>, vector<1x8x128xf32>
    %7 = vector.shape_cast %6 : vector<1x8x128xf32> to vector<8x128xf32>
    %8 = vector.shape_cast %5 : vector<8x128xf32> to vector<1x8x128xf32>
    tpu.vector_store %arg4[%c0_6, %c0_7, %c0_8], %8 {strides = array<i32>} : memref<1x8x128xf32, #tpu.memory_space<vmem>>, vector<1x8x128xf32>,
    return
  }
  func.func @transform_0(%arg0: i32) -> (i32, i32, i32) {
    %c0_i32 = arith.constant 0 : i32
    %c0_i32_0 = arith.constant 0 : i32
    %c0_i32_1 = arith.constant 0 : i32
    return %arg0, %c0_i32, %c0_i32_0 : i32, i32, i32
  }
  func.func @transform_1(%arg0: i32) -> (i32, i32) {
    %c0_i32 = arith.constant 0 : i32
    %c0_i32_0 = arith.constant 0 : i32
    %c0_i32_1 = arith.constant 0 : i32
    return %c0_i32, %c0_i32_0 : i32, i32
  }
  func.func @transform_2(%arg0: i32) -> (i32, i32) {
    %c0_i32 = arith.constant 0 : i32
    %c0_i32_0 = arith.constant 0 : i32
    %c0_i32_1 = arith.constant 0 : i32
    return %c0_i32, %c0_i32_0 : i32, i32
  }
  func.func @transform_3(%arg0: i32) -> (i32, i32, i32) {
    %c0_i32 = arith.constant 0 : i32
    %c0_i32_0 = arith.constant 0 : i32
    %c0_i32_1 = arith.constant 0 : i32
    return %arg0, %c0_i32, %c0_i32_0 : i32, i32, i32
  }
}

</mosaic_0001>

<bundles_post_ra>
// kernel: tpu_custom_call.1
= control target key start
LH: loop header
LB: loop body
LE: loop exit
PB: predicated region body
PF: predicated region fallthrough
CT: control target
= control target key end

     0   :  { %8 = vsyncpa [#allocation3], 0  ;;  %s499_s0 = inlined_call_operand.vmem [shape: f32[2,8,4], index: 0, kind: input, shape index: {}]   ;;  %s500_s1 = inlined_call_operand.vmem [shape: f32[4,128], index: 1, kind: input, shape index: {}]   ;;  %s501_s2 = inlined_call_operand.vmem [shape: f32[8,128], index: 2, kind: input, shape index: {}]   ;;  %s502_s3 = inlined_call_operand.hbm [shape: f32[2,8,128], index: 3, kind: output, shape index: {}]  }
   0x1   :  { %10 = vsyncpa [#allocation3 + $0x1], 0  ;;  %s408_s12 = smov 0   ;;  %s410_s13 = smov 0  }
   0x2   :  { %s412_s14 = smov 0   ;;  %s414_s15 = smov 0  }
   0x3 LB: > { %s429_s16 = sadd.s32 4294967295, %s386_s15   ;;  %s273_s17 = sadd.s32 4294967294, %s386_s15   ;;  %s386_s15 = sphi %s414_s15, %s508_s15   ;;  %s382_s14 = sphi %s412_s14, %s507_s14   ;;  %s378_s13 = sphi %s410_s13, %s506_s13   ;;  %s374_s12 = sphi %s408_s12, %s505_s12  }
   0x4   : > { %s433_s18 = sadd.s32 1, %s386_s15   ;;  %s91_s19 = sadd.s32 1, %s382_s14 }
   0x5   : > { %s88_s20 = ssub.s32 %s386_s15, %s433_s18  ;;  %p101_p0 = scmp.ne.s32.totalorder %s382_s14, %s378_s13 }
   0x6   : > { %p89_p1 = scmp.eq.s32.totalorder %s88_s20, 0  ;;  %p102_p2 = scmp.eq.s32.totalorder %s429_s16, 1 }
   0x7   : > { %p107_p3 = scmp.ne.s32.totalorder %s378_s13, %s374_s12  ;;  %p108_p4 = scmp.eq.s32.totalorder %s273_s17, 1 }
   0x8   : > { %s444_s21 = scalar_select %p89_p1, %s382_s14, %s91_s19  }
   0x9   : > { %p446_p5 = por %p102_p2, %p101_p0  ;;  %p450_p6 = por %p108_p4, %p107_p3 }
   0xa   : > { %p276_p7 = scmp.ge.s32.totalorder %s386_s15, 1  ;;  %p139_p8 = scmp.lt.s32.totalorder %s386_s15, 3 }
   0xc   : > { %p140_p9 = pnand %p276_p7, %p139_p8 }
   0xd   : > { %p162_p10 = scmp.lt.s32.totalorder (!%p140_p9), %s429_s16, 1  ;;  %s159_s4 = sand.u32 (!%p140_p9), 1, %s378_s13  }
   0xe   : > { %143 = sbr.rel (%p140_p9) target bundleno = 155 (0x9b), region = 32  ;;  %s277_s5 = sshll.u32 (!%p140_p9), %s159_s4, 3 }
   0xf   : > { %s282_s6 = sshll.u32 (!%p140_p9), %s429_s16, 3  ;;  %s161_s17 = scalar_lea.vmem (!%p140_p9), [#allocation2], %s277_s5 }
  0x10   : > { %s209_s9 = scalar_lea.hbm (!%p140_p9), %s502_s3, %s282_s6  ;;  %s211_s19 = sshll.u32 (!%p140_p9), %s161_s17, 4  ;;  %s212_s19 = int_to_ptr.vmem [resolvable:$true] %s211_s19 }
  0x11   : > { %s213_s20 = sshll.u32 (!%p140_p9), %s209_s9, 4  ;;  %s199_s24 = scalar_lea.sflag (!%p140_p9), [#allocation3], %s159_s4  ;;  %s214_s20 = int_to_ptr.hbm [resolvable:$true] %s213_s20 }
  0x12   : > { %s338_s25 = sshra.s32 (!%p140_p9), %s214_s20, 4  ;;  %s344_s28 = scalar_lea.hbm (!%p140_p9), %s502_s3, 16  ;;  %s339_s25 = int_to_ptr.hbm [resolvable:$true] %s338_s25 }
  0x13   : > { %v167_v0 = vld [vmem:[%s500_s1] sm:$0xf]  ;;  %vm173_vm0 = vcmask 1043456   ;;  %s163_s26 = scalar_select %p162_p10, %s429_s16, 1  ;;  %vm169_vm1 = vcmask 31744  }
  0x14   : > { %279 = vmatpush.msk.msra.mxu0 %vm173_vm0, %v167_v0  ;;  %v168_v2 = vld [vmem:[%s501_s2] sm:$0xff]  ;;  %s340_s16 = scalar_lea.hbm %s339_s25, 8  ;;  %p345_p0 = scmp.lt.s32.totalorder %s339_s25, %s502_s3 }
  0x15   : > { %s278_s27 = sshll.u32 %s163_s26, 3  ;;  %p341_p11 = scmp.ne.s32.totalorder %s339_s25, %s340_s16 }
  0x16   : > { %s165_s30 = scalar_lea.vmem %s499_s0, %s278_s27  ;;  %p346_p1 = scmp.lt.s32.totalorder %s344_s28, %s340_s16 }
  0x17   : > { %v166_v1 = vld [vmem:[%s165_s30] sm:$0xff]  ;;  %p342_p12 = pnand %p341_p11, %p446_p5 }
  0x18   : > { %280 = vmatmul.msk.f32.vlgmr.msra.gmra.mxu0 %vm169_vm1, %v166_v1  ;;  %p347_p2 = por %p346_p1, %p345_p0 }
  0x19   : > { %p343_p13 = pneg %p342_p12 }
  0x1b   : > { %p348_p3 = pnand %p347_p2, %p343_p13 }
  0x95   : > { %v194_v3 = vpop.f32.mrf.mxu0 }
  0x96   : > { %v195_v4 = vadd.f32 %v194_v3, %v168_v2 }
  0x98   : > { %197 = vst [vmem:[%s161_s17] sm:$0xff] %v195_v4 }
  0x99   : > { %351 = shalt.err (!%p348_p3)
}
  0x9a   : > { %285 = dma.vmem_to_hbm [thread:$0]  (%p446_p5), %s212_s19, 128, %s214_s20, %s199_s24  }
  0x9b PF: > { %p291_p4 = scmp.ge.s32.totalorder %s386_s15, 2  ;;  %s225_s4 = sand.u32 1, %s374_s12  }
  0x9c   : > { %s226_s5 = scalar_lea.sflag [#allocation3], %s225_s4 }
  0x9d   : > { %p288_p7 = pnand %p291_p4, %p450_p6 }
  0x9f   : > { %p289_p8 = pneg %p288_p7 }
  0xa1   : > { %369 = dma.done.wait (%p289_p8), %s226_s5, 128  }
  0xa2   : > { %371 = vsyncadd (%p289_p8), %s226_s5, 4294967168  ;;  %p13_p9 = scmp.ge.s32.totalorder %s433_s18, 4   ;;  %s505_s12 = smov %s378_s13 }
  0xa3   : > { %s506_s13 = smov %s382_s14  ;;  %s507_s14 = smov %s444_s21 }
  0xa4   : > { %s508_s15 = smov %s433_s18  ;;  %15 = sbr.rel (!%p13_p9) target bundleno = 3 (0x3), region = 67 }
  0xa9   :  { %232 = vsyncpa [#allocation3], 1 }
  0xaa   :  { %234 = vsyncpa [#allocation3 + $0x1], 1 }

</bundles_post_ra>
